<compile_context>
chip_gen: v6e
topology: v6e:2x2x1
jax: 0.10.0
libtpu: 0.0.40
codegen_flags: <defaults>
</compile_context>

<pallas_src>
import math

import jax
import jax.numpy as jnp
from jax.experimental import pallas as pl
from jax.experimental.pallas import tpu as pltpu

# ---- model configuration (small, consistent with the module's __init__) ----
SEQ = 8
HIDDEN = 32
NUM_HEADS = 4
NUM_KV_HEADS = 2
HEAD_DIM = HIDDEN // NUM_HEADS          # 8
Q_SIZE = NUM_HEADS * HEAD_DIM           # 32
KV_SIZE = NUM_KV_HEADS * HEAD_DIM       # 16
QKV_DIM = Q_SIZE + 2 * KV_SIZE          # 64
HEADS_PER_KV = NUM_HEADS // NUM_KV_HEADS
SCALE = HEAD_DIM ** -0.5
ROPE_THETA = 10000.0
NEG_INF = -1e30

# ---- batching / tiling ------------------------------------------------------
BATCH = 8                               # sequences in the demo batch
SEQS_PER_BLOCK = 4                      # sequences per grid step
BLK_TOKENS = SEQS_PER_BLOCK * SEQ                   # 32 rows per step
BLK_SCORES = SEQS_PER_BLOCK * NUM_HEADS * SEQ       # 128 score lanes (lane-dense)
QV_EXT = 2 * Q_SIZE + KV_SIZE                       # q | rot(q) | v columns = 80
KT_EXT = 2 * KV_SIZE                                # kT | rot(k)T rows      = 32


def exaone_attn_kernel(x_ref, xt_ref, rqv_ref, rkt_ref, wqv_ref, wkt_ref,
                       wout_ref, bias_ref, seg_ref, o_ref, kt_scr, v_scr):
    f32 = jnp.float32

    # ---- fused Q / rot(Q) / V projection, one MXU push ([32,32]x[32,80]) ----
    qv = jnp.dot(x_ref[...], wqv_ref[...], preferred_element_type=f32)   # [32, 80]
    qv = qv * rqv_ref[...]               # merged [cos|sin|1] table; SCALE is in W_q
    q = qv[:, :Q_SIZE] + qv[:, Q_SIZE:2 * Q_SIZE]     # roped + scaled Q   [32, 32]
    v = qv[:, 2 * Q_SIZE:]                            # V                  [32, 16]

    # ---- K^T produced contraction-major: W_k^T @ x^T (no in-kernel transpose,
    #      no NT dot_general).  rot(K)^T comes from the same matmul. ----------
    kt = jnp.dot(wkt_ref[...], xt_ref[...], preferred_element_type=f32)  # [32, 32]
    kt = kt * rkt_ref[...]               # merged [cos ; sin] table (transposed)
    kt = kt[:KV_SIZE, :] + kt[KV_SIZE:, :]            # roped K^T          [16, 32]

    # ---- scatter per-(sequence, head) tiles into block-diagonal K^T and V ---
    # kt_scr: [Q_SIZE, BLK_SCORES]  (head-block rows x (seq,head) score cols)
    # v_scr : [BLK_SCORES, Q_SIZE]  ((seq,head) score rows x head-block cols)
    kt_scr[...] = jnp.zeros((Q_SIZE, BLK_SCORES), f32)
    v_scr[...] = jnp.zeros((BLK_SCORES, Q_SIZE), f32)
    for b in range(SEQS_PER_BLOCK):
        for h in range(NUM_HEADS):
            kv = h // HEADS_PER_KV       # contiguous GQA head grouping
            blk = (b * NUM_HEADS + h) * SEQ
            kt_scr[h * HEAD_DIM:(h + 1) * HEAD_DIM, blk:blk + SEQ] = (
                kt[kv * HEAD_DIM:(kv + 1) * HEAD_DIM, b * SEQ:(b + 1) * SEQ])
            v_scr[blk:blk + SEQ, h * HEAD_DIM:(h + 1) * HEAD_DIM] = (
                v[b * SEQ:(b + 1) * SEQ, kv * HEAD_DIM:(kv + 1) * HEAD_DIM])

    # ---- block-diagonal attention: one score matmul, one softmax, one PV ----
    s = jnp.dot(q, kt_scr[...], preferred_element_type=f32) + bias_ref[...]  # [32, 128]
    # Global row max as stabilizer for all head blocks (exact per-block softmax
    # since the shift cancels; cross-sequence / non-causal entries are -1e30 so
    # exp() underflows to exactly 0).
    m = jnp.max(s, axis=-1, keepdims=True)
    p = jnp.exp(s - m)                                                       # [32, 128]
    o_un = jnp.dot(p, v_scr[...], preferred_element_type=f32)                # [32, 32]
    l = jnp.dot(p, seg_ref[...], preferred_element_type=f32)                 # per-head denom
    attn = o_un / jnp.maximum(l, 1e-30)   # exact divide; clamp guards underflowed blocks

    # ---- output projection ---------------------------------------------------
    # (HIDDEN=32 is an artifact of the toy config; real hidden sizes >=128 make
    #  this store lane-dense automatically.)
    o_ref[...] = jnp.dot(attn, wout_ref[...], preferred_element_type=f32)    # [32, 32]


# ---------------------------------------------------------------------------
# Wrapper-side one-time preparation (would be cached at weight-load time).
# ---------------------------------------------------------------------------
def _rotate_half_cols(w, n_heads):
    """Column-permuted/signed copy of w so that x @ w_rot == rotate_half(x @ w)."""
    w3 = w.reshape(HIDDEN, n_heads, HEAD_DIM)
    half = HEAD_DIM // 2
    w_rot = jnp.concatenate([-w3[..., half:], w3[..., :half]], axis=-1)
    return w_rot.reshape(HIDDEN, n_heads * HEAD_DIM)


def _prepare_weights(w_qkv):
    w_q = w_qkv[:, :Q_SIZE]
    w_k = w_qkv[:, Q_SIZE:Q_SIZE + KV_SIZE]
    w_v = w_qkv[:, Q_SIZE + KV_SIZE:]
    w_q_rot = _rotate_half_cols(w_q, NUM_HEADS)
    w_k_rot = _rotate_half_cols(w_k, NUM_KV_HEADS)
    # attention scale folded into the Q columns
    w_qv_ext = jnp.concatenate([w_q * SCALE, w_q_rot * SCALE, w_v], axis=1)  # [32, 80]
    w_kt_ext = jnp.concatenate([w_k.T, w_k_rot.T], axis=0)                   # [32, 32]
    return w_qv_ext, w_kt_ext


def _rope_tables(positions_flat):
    """Merged RoPE multiplier tables for the widened projections."""
    pos = positions_flat.astype(jnp.float32)                                  # [T]
    inv = 1.0 / (ROPE_THETA ** (
        jnp.arange(0, HEAD_DIM, 2, dtype=jnp.float32) / HEAD_DIM))            # [D/2]
    fr = pos[:, None] * inv[None, :]                                          # [T, D/2]
    cos = jnp.cos(fr)
    sin = jnp.sin(fr)
    cos_full = jnp.concatenate([cos, cos], axis=-1)                           # [T, D]
    sin_full = jnp.concatenate([sin, sin], axis=-1)                           # [T, D]
    t = positions_flat.shape[0]
    rope_qv = jnp.concatenate(
        [jnp.tile(cos_full, (1, NUM_HEADS)),
         jnp.tile(sin_full, (1, NUM_HEADS)),
         jnp.ones((t, KV_SIZE), jnp.float32)], axis=1)                        # [T, 80]
    rope_kt = jnp.concatenate(
        [jnp.tile(cos_full, (1, NUM_KV_HEADS)).T,
         jnp.tile(sin_full, (1, NUM_KV_HEADS)).T], axis=0)                    # [32, T]
    return rope_qv, rope_kt


def _static_mask_and_seg():
    """Static additive (causal + same-sequence) bias and GQA segment matrix."""
    r = jnp.arange(BLK_TOKENS)
    c = jnp.arange(BLK_SCORES)
    r_seq, r_pos = r // SEQ, r % SEQ
    c_seq, c_pos = (c // SEQ) // NUM_HEADS, c % SEQ
    valid = (r_seq[:, None] == c_seq[None, :]) & (c_pos[None, :] <= r_pos[:, None])
    bias = jnp.where(valid, 0.0, NEG_INF).astype(jnp.float32)                 # [32, 128]

    rr = jnp.arange(BLK_SCORES)
    cc = jnp.arange(Q_SIZE)
    seg = ((rr // SEQ) % NUM_HEADS)[:, None] == (cc // HEAD_DIM)[None, :]
    seg = seg.astype(jnp.float32)                                             # [128, 32]
    return bias, seg


@jax.jit
def exaone_block_attention(positions, hidden_states, w_qkv, w_out):
    """positions: [B, S] int32, hidden_states: [B, S, HIDDEN] f32."""
    b, s, _ = hidden_states.shape
    assert s == SEQ and b % SEQS_PER_BLOCK == 0
    t = b * s
    num_blocks = t // BLK_TOKENS

    x = hidden_states.reshape(t, HIDDEN)
    # transposed copy so K^T is produced contraction-major in the kernel
    x_t3 = x.reshape(num_blocks, BLK_TOKENS, HIDDEN).transpose(0, 2, 1)       # [nb, 32, 32]

    rope_qv, rope_kt = _rope_tables(positions.reshape(t))
    rope_kt3 = rope_kt.reshape(KT_EXT, num_blocks, BLK_TOKENS).transpose(1, 0, 2)

    w_qv_ext, w_kt_ext = _prepare_weights(w_qkv)
    bias, seg = _static_mask_and_seg()

    out = pl.pallas_call(
        exaone_attn_kernel,
        out_shape=jax.ShapeDtypeStruct((t, HIDDEN), jnp.float32),
        grid_spec=pltpu.PrefetchScalarGridSpec(
            num_scalar_prefetch=0,
            grid=(num_blocks,),
            in_specs=[
                pl.BlockSpec((BLK_TOKENS, HIDDEN), lambda i: (i, 0)),          # x
                pl.BlockSpec((None, HIDDEN, BLK_TOKENS), lambda i: (i, 0, 0)), # x^T
                pl.BlockSpec((BLK_TOKENS, QV_EXT), lambda i: (i, 0)),          # rope_qv
                pl.BlockSpec((None, KT_EXT, BLK_TOKENS), lambda i: (i, 0, 0)), # rope_kt
                pl.BlockSpec((HIDDEN, QV_EXT), lambda i: (0, 0)),              # W_qv_ext
                pl.BlockSpec((KT_EXT, HIDDEN), lambda i: (0, 0)),              # W_kT_ext
                pl.BlockSpec((Q_SIZE, HIDDEN), lambda i: (0, 0)),              # W_out
                pl.BlockSpec((BLK_TOKENS, BLK_SCORES), lambda i: (0, 0)),      # mask bias
                pl.BlockSpec((BLK_SCORES, Q_SIZE), lambda i: (0, 0)),          # segment mat
            ],
            out_specs=pl.BlockSpec((BLK_TOKENS, HIDDEN), lambda i: (i, 0)),
            scratch_shapes=[
                pltpu.VMEM((Q_SIZE, BLK_SCORES), jnp.float32),   # block-diag K^T
                pltpu.VMEM((BLK_SCORES, Q_SIZE), jnp.float32),   # block-diag V
            ],
        ),
        compiler_params=pltpu.CompilerParams(
            dimension_semantics=("parallel",),          # megacore-shardable on v7x
            vmem_limit_bytes=32 * 1024 * 1024,          # safe within v7x's 64 MiB VMEM
        ),
    )(x, x_t3, rope_qv, rope_kt3, w_qv_ext, w_kt_ext, w_out, bias, seg)
    return out.reshape(b, s, HIDDEN)


# ---------------------------------------------------------------------------
# Pure-JAX reference (same math, high-precision contractions for comparison).
# ---------------------------------------------------------------------------
def reference(positions, hidden_states, w_qkv, w_out):
    hp = jax.lax.Precision.HIGHEST
    b, s, _ = hidden_states.shape
    pos = positions.astype(jnp.float32)
    inv = 1.0 / (ROPE_THETA ** (
        jnp.arange(0, HEAD_DIM, 2, dtype=jnp.float32) / HEAD_DIM))
    fr = pos[..., None] * inv
    cos, sin = jnp.cos(fr), jnp.sin(fr)

    qkv = jnp.einsum('bsi,io->bso', hidden_states, w_qkv, precision=hp)
    q = qkv[..., :Q_SIZE].reshape(b, s, NUM_HEADS, HEAD_DIM)
    k = qkv[..., Q_SIZE:Q_SIZE + KV_SIZE].reshape(b, s, NUM_KV_HEADS, HEAD_DIM)
    v = qkv[..., Q_SIZE + KV_SIZE:].reshape(b, s, NUM_KV_HEADS, HEAD_DIM)

    def rope(t):
        t1, t2 = t[..., :HEAD_DIM // 2], t[..., HEAD_DIM // 2:]
        c, s_ = cos[:, :, None, :], sin[:, :, None, :]
        return jnp.concatenate([t1 * c - t2 * s_, t2 * c + t1 * s_], axis=-1)

    q, k = rope(q), rope(k)
    k = jnp.repeat(k, HEADS_PER_KV, axis=2)
    v = jnp.repeat(v, HEADS_PER_KV, axis=2)

    scores = jnp.einsum('bqhd,bkhd->bhqk', q, k, precision=hp) * SCALE
    mask = jnp.tril(jnp.ones((s, s), dtype=bool))
    scores = jnp.where(mask[None, None], scores, NEG_INF)
    p = jax.nn.softmax(scores, axis=-1)
    o = jnp.einsum('bhqk,bkhd->bqhd', p, v, precision=hp).reshape(b, s, Q_SIZE)
    return jnp.einsum('bsi,io->bso', o, w_out, precision=hp)


if __name__ == "__main__":
    key = jax.random.PRNGKey(0)
    k1, k2, k3 = jax.random.split(key, 3)

    hidden_states = jax.random.normal(k1, (BATCH, SEQ, HIDDEN), dtype=jnp.float32)
    positions = jnp.tile(jnp.arange(SEQ, dtype=jnp.int32)[None, :], (BATCH, 1))
    # Deterministic synthetic weights stored [in_features, out_features]
    # (kernel computes x @ W, equivalent to nn.Linear's x @ W.T), bias=False.
    w_qkv = jax.random.normal(k2, (HIDDEN, QKV_DIM), dtype=jnp.float32) / math.sqrt(HIDDEN)
    w_out = jax.random.normal(k3, (Q_SIZE, HIDDEN), dtype=jnp.float32) / math.sqrt(Q_SIZE)

    out = exaone_block_attention(positions, hidden_states, w_qkv, w_out)
    out = jax.block_until_ready(out)

    ref = reference(positions, hidden_states, w_qkv, w_out)
    assert out.shape == (BATCH, SEQ, HIDDEN)
    err = float(jnp.max(jnp.abs(out - ref)))
    assert jnp.allclose(out, ref, atol=2e-4, rtol=2e-4), (
        f"mismatch vs JAX reference (max abs err {err})")

    print("KERNEL_OK")
</pallas_src>

<mosaic_0001>
module attributes {stable_mosaic.version = 11 : i64} {
  func.func @exaone_attn_kernel(%arg0: i32, %arg1: memref<32x32xf32, #tpu.memory_space<vmem>>, %arg2: memref<1x32x32xf32, #tpu.memory_space<vmem>>, %arg3: memref<32x80xf32, #tpu.memory_space<vmem>>, %arg4: memref<1x32x32xf32, #tpu.memory_space<vmem>>, %arg5: memref<32x80xf32, #tpu.memory_space<vmem>>, %arg6: memref<32x32xf32, #tpu.memory_space<vmem>>, %arg7: memref<32x32xf32, #tpu.memory_space<vmem>>, %arg8: memref<32x128xf32, #tpu.memory_space<vmem>>, %arg9: memref<128x32xf32, #tpu.memory_space<vmem>>, %arg10: memref<32x32xf32, #tpu.memory_space<vmem>>, %arg11: memref<32x128xf32, #tpu.memory_space<vmem>>, %arg12: memref<128x32xf32, #tpu.memory_space<vmem>>) attributes {dimension_semantics = [#tpu.dimension_semantics<parallel>], iteration_bounds = array<i64: 2>, scalar_prefetch = 0 : i64, scratch_operands = 2 : i64, tpu.core_type = #tpu.core_type<tc>, window_params = [{transform_indices = @transform_0, window_bounds = array<i64: 32, 32>}, {transform_indices = @transform_1, window_bounds = array<i64: 1, 32, 32>}, {transform_indices = @transform_2, window_bounds = array<i64: 32, 80>}, {transform_indices = @transform_3, window_bounds = array<i64: 1, 32, 32>}, {pipeline_mode = #tpu.pipeline_mode<synchronous>, transform_indices = @transform_4, window_bounds = array<i64: 32, 80>}, {pipeline_mode = #tpu.pipeline_mode<synchronous>, transform_indices = @transform_5, window_bounds = array<i64: 32, 32>}, {pipeline_mode = #tpu.pipeline_mode<synchronous>, transform_indices = @transform_6, window_bounds = array<i64: 32, 32>}, {pipeline_mode = #tpu.pipeline_mode<synchronous>, transform_indices = @transform_7, window_bounds = array<i64: 32, 128>}, {pipeline_mode = #tpu.pipeline_mode<synchronous>, transform_indices = @transform_8, window_bounds = array<i64: 128, 32>}, {transform_indices = @transform_9, window_bounds = array<i64: 32, 32>}]} {
    %c0 = arith.constant 0 : index
    %c0_0 = arith.constant 0 : index
    %0 = vector.load %arg1[%c0, %c0_0] : memref<32x32xf32, #tpu.memory_space<vmem>>, vector<32x32xf32>
    %c0_1 = arith.constant 0 : index
    %c0_2 = arith.constant 0 : index
    %1 = vector.load %arg5[%c0_1, %c0_2] : memref<32x80xf32, #tpu.memory_space<vmem>>, vector<32x80xf32>
    %cst = arith.constant dense<0.000000e+00> : vector<32x80xf32>
    %2 = tpu.matmul %0, %1, %cst {dimension_numbers = #tpu.dot_dimension_numbers<[1], [0], [0], [1], [0, 0, 1, 1], [], []>} : vector<32x32xf32>, vector<32x80xf32>, vector<32x80xf32> -> vector<32x80xf32>
    %c0_3 = arith.constant 0 : index
    %c0_4 = arith.constant 0 : index
    %3 = vector.load %arg3[%c0_3, %c0_4] : memref<32x80xf32, #tpu.memory_space<vmem>>, vector<32x80xf32>
    %4 = arith.mulf %2, %3 : vector<32x80xf32>
    %5 = vector.extract_strided_slice %4 {offsets = [0, 0], sizes = [32, 32], strides = [1, 1]} : vector<32x80xf32> to vector<32x32xf32>
    %6 = vector.extract_strided_slice %4 {offsets = [0, 32], sizes = [32, 32], strides = [1, 1]} : vector<32x80xf32> to vector<32x32xf32>
    %7 = arith.addf %5, %6 : vector<32x32xf32>
    %8 = vector.extract_strided_slice %4 {offsets = [0, 64], sizes = [32, 16], strides = [1, 1]} : vector<32x80xf32> to vector<32x16xf32>
    %c0_5 = arith.constant 0 : index
    %c0_6 = arith.constant 0 : index
    %9 = vector.load %arg6[%c0_5, %c0_6] : memref<32x32xf32, #tpu.memory_space<vmem>>, vector<32x32xf32>
    %c0_7 = arith.constant 0 : index
    %c0_8 = arith.constant 0 : index
    %c0_9 = arith.constant 0 : index
    %10 = vector.load %arg2[%c0_7, %c0_8, %c0_9] : memref<1x32x32xf32, #tpu.memory_space<vmem>>, vector<1x32x32xf32>
    %11 = vector.shape_cast %10 : vector<1x32x32xf32> to vector<32x32xf32>
    %cst_10 = arith.constant dense<0.000000e+00> : vector<32x32xf32>
    %12 = tpu.matmul %9, %11, %cst_10 {dimension_numbers = #tpu.dot_dimension_numbers<[1], [0], [0], [1], [0, 0, 1, 1], [], []>} : vector<32x32xf32>, vector<32x32xf32>, vector<32x32xf32> -> vector<32x32xf32>
    %c0_11 = arith.constant 0 : index
    %c0_12 = arith.constant 0 : index
    %c0_13 = arith.constant 0 : index
    %13 = vector.load %arg4[%c0_11, %c0_12, %c0_13] : memref<1x32x32xf32, #tpu.memory_space<vmem>>, vector<1x32x32xf32>
    %14 = vector.shape_cast %13 : vector<1x32x32xf32> to vector<32x32xf32>
    %15 = arith.mulf %12, %14 : vector<32x32xf32>
    %16 = vector.extract_strided_slice %15 {offsets = [0, 0], sizes = [16, 32], strides = [1, 1]} : vector<32x32xf32> to vector<16x32xf32>
    %17 = vector.extract_strided_slice %15 {offsets = [16, 0], sizes = [16, 32], strides = [1, 1]} : vector<32x32xf32> to vector<16x32xf32>
    %18 = arith.addf %16, %17 : vector<16x32xf32>
    %cst_14 = arith.constant 0.000000e+00 : f32
    %19 = vector.broadcast %cst_14 : f32 to vector<32x128xf32>
    %c0_15 = arith.constant 0 : index
    %c0_16 = arith.constant 0 : index
    %20 = vector.load %arg11[%c0_15, %c0_16] : memref<32x128xf32, #tpu.memory_space<vmem>>, vector<32x128xf32>
    tpu.vector_store %arg11[%c0_15, %c0_16], %19 {strides = array<i32>} : memref<32x128xf32, #tpu.memory_space<vmem>>, vector<32x128xf32>,
    %cst_17 = arith.constant 0.000000e+00 : f32
    %21 = vector.broadcast %cst_17 : f32 to vector<128x32xf32>
    %c0_18 = arith.constant 0 : index
    %c0_19 = arith.constant 0 : index
    %22 = vector.load %arg12[%c0_18, %c0_19] : memref<128x32xf32, #tpu.memory_space<vmem>>, vector<128x32xf32>
    tpu.vector_store %arg12[%c0_18, %c0_19], %21 {strides = array<i32>} : memref<128x32xf32, #tpu.memory_space<vmem>>, vector<128x32xf32>,
    %23 = vector.extract_strided_slice %18 {offsets = [0, 0], sizes = [8, 8], strides = [1, 1]} : vector<16x32xf32> to vector<8x8xf32>
    %c0_20 = arith.constant 0 : index
    %c0_21 = arith.constant 0 : index
    %24 = vector.load %arg11[%c0_20, %c0_21] : memref<32x128xf32, #tpu.memory_space<vmem>>, vector<8x8xf32>
    tpu.vector_store %arg11[%c0_20, %c0_21], %23 {strides = array<i32>} : memref<32x128xf32, #tpu.memory_space<vmem>>, vector<8x8xf32>,
    %25 = vector.extract_strided_slice %8 {offsets = [0, 0], sizes = [8, 8], strides = [1, 1]} : vector<32x16xf32> to vector<8x8xf32>
    %c0_22 = arith.constant 0 : index
    %c0_23 = arith.constant 0 : index
    %26 = vector.load %arg12[%c0_22, %c0_23] : memref<128x32xf32, #tpu.memory_space<vmem>>, vector<8x8xf32>
    tpu.vector_store %arg12[%c0_22, %c0_23], %25 {strides = array<i32>} : memref<128x32xf32, #tpu.memory_space<vmem>>, vector<8x8xf32>,
    %27 = vector.extract_strided_slice %18 {offsets = [0, 0], sizes = [8, 8], strides = [1, 1]} : vector<16x32xf32> to vector<8x8xf32>
    %c8 = arith.constant 8 : index
    %c8_24 = arith.constant 8 : index
    %28 = vector.load %arg11[%c8, %c8_24] : memref<32x128xf32, #tpu.memory_space<vmem>>, vector<8x8xf32>
    tpu.vector_store %arg11[%c8, %c8_24], %27 {strides = array<i32>} : memref<32x128xf32, #tpu.memory_space<vmem>>, vector<8x8xf32>,
    %29 = vector.extract_strided_slice %8 {offsets = [0, 0], sizes = [8, 8], strides = [1, 1]} : vector<32x16xf32> to vector<8x8xf32>
    %c8_25 = arith.constant 8 : index
    %c8_26 = arith.constant 8 : index
    %30 = vector.load %arg12[%c8_25, %c8_26] : memref<128x32xf32, #tpu.memory_space<vmem>>, vector<8x8xf32>
    tpu.vector_store %arg12[%c8_25, %c8_26], %29 {strides = array<i32>} : memref<128x32xf32, #tpu.memory_space<vmem>>, vector<8x8xf32>,
    %31 = vector.extract_strided_slice %18 {offsets = [8, 0], sizes = [8, 8], strides = [1, 1]} : vector<16x32xf32> to vector<8x8xf32>
    %c16 = arith.constant 16 : index
    %c16_27 = arith.constant 16 : index
    %32 = vector.load %arg11[%c16, %c16_27] : memref<32x128xf32, #tpu.memory_space<vmem>>, vector<8x8xf32>
    tpu.vector_store %arg11[%c16, %c16_27], %31 {strides = array<i32>} : memref<32x128xf32, #tpu.memory_space<vmem>>, vector<8x8xf32>,
    %33 = vector.extract_strided_slice %8 {offsets = [0, 8], sizes = [8, 8], strides = [1, 1]} : vector<32x16xf32> to vector<8x8xf32>
    %c16_28 = arith.constant 16 : index
    %c16_29 = arith.constant 16 : index
    %34 = vector.load %arg12[%c16_28, %c16_29] : memref<128x32xf32, #tpu.memory_space<vmem>>, vector<8x8xf32>
    tpu.vector_store %arg12[%c16_28, %c16_29], %33 {strides = array<i32>} : memref<128x32xf32, #tpu.memory_space<vmem>>, vector<8x8xf32>,
    %35 = vector.extract_strided_slice %18 {offsets = [8, 0], sizes = [8, 8], strides = [1, 1]} : vector<16x32xf32> to vector<8x8xf32>
    %c24 = arith.constant 24 : index
    %c24_30 = arith.constant 24 : index
    %36 = vector.load %arg11[%c24, %c24_30] : memref<32x128xf32, #tpu.memory_space<vmem>>, vector<8x8xf32>
    tpu.vector_store %arg11[%c24, %c24_30], %35 {strides = array<i32>} : memref<32x128xf32, #tpu.memory_space<vmem>>, vector<8x8xf32>,
    %37 = vector.extract_strided_slice %8 {offsets = [0, 8], sizes = [8, 8], strides = [1, 1]} : vector<32x16xf32> to vector<8x8xf32>
    %c24_31 = arith.constant 24 : index
    %c24_32 = arith.constant 24 : index
    %38 = vector.load %arg12[%c24_31, %c24_32] : memref<128x32xf32, #tpu.memory_space<vmem>>, vector<8x8xf32>
    tpu.vector_store %arg12[%c24_31, %c24_32], %37 {strides = array<i32>} : memref<128x32xf32, #tpu.memory_space<vmem>>, vector<8x8xf32>,
    %39 = vector.extract_strided_slice %18 {offsets = [0, 8], sizes = [8, 8], strides = [1, 1]} : vector<16x32xf32> to vector<8x8xf32>
    %c0_33 = arith.constant 0 : index
    %c32 = arith.constant 32 : index
    %40 = vector.load %arg11[%c0_33, %c32] : memref<32x128xf32, #tpu.memory_space<vmem>>, vector<8x8xf32>
    tpu.vector_store %arg11[%c0_33, %c32], %39 {strides = array<i32>} : memref<32x128xf32, #tpu.memory_space<vmem>>, vector<8x8xf32>,
    %41 = vector.extract_strided_slice %8 {offsets = [8, 0], sizes = [8, 8], strides = [1, 1]} : vector<32x16xf32> to vector<8x8xf32>
    %c32_34 = arith.constant 32 : index
    %c0_35 = arith.constant 0 : index
    %42 = vector.load %arg12[%c32_34, %c0_35] : memref<128x32xf32, #tpu.memory_space<vmem>>, vector<8x8xf32>
    tpu.vector_store %arg12[%c32_34, %c0_35], %41 {strides = array<i32>} : memref<128x32xf32, #tpu.memory_space<vmem>>, vector<8x8xf32>,
    %43 = vector.extract_strided_slice %18 {offsets = [0, 8], sizes = [8, 8], strides = [1, 1]} : vector<16x32xf32> to vector<8x8xf32>
    %c8_36 = arith.constant 8 : index
    %c40 = arith.constant 40 : index
    %44 = vector.load %arg11[%c8_36, %c40] : memref<32x128xf32, #tpu.memory_space<vmem>>, vector<8x8xf32>
    tpu.vector_store %arg11[%c8_36, %c40], %43 {strides = array<i32>} : memref<32x128xf32, #tpu.memory_space<vmem>>, vector<8x8xf32>,
    %45 = vector.extract_strided_slice %8 {offsets = [8, 0], sizes = [8, 8], strides = [1, 1]} : vector<32x16xf32> to vector<8x8xf32>
    %c40_37 = arith.constant 40 : index
    %c8_38 = arith.constant 8 : index
    %46 = vector.load %arg12[%c40_37, %c8_38] : memref<128x32xf32, #tpu.memory_space<vmem>>, vector<8x8xf32>
    tpu.vector_store %arg12[%c40_37, %c8_38], %45 {strides = array<i32>} : memref<128x32xf32, #tpu.memory_space<vmem>>, vector<8x8xf32>,
    %47 = vector.extract_strided_slice %18 {offsets = [8, 8], sizes = [8, 8], strides = [1, 1]} : vector<16x32xf32> to vector<8x8xf32>
    %c16_39 = arith.constant 16 : index
    %c48 = arith.constant 48 : index
    %48 = vector.load %arg11[%c16_39, %c48] : memref<32x128xf32, #tpu.memory_space<vmem>>, vector<8x8xf32>
    tpu.vector_store %arg11[%c16_39, %c48], %47 {strides = array<i32>} : memref<32x128xf32, #tpu.memory_space<vmem>>, vector<8x8xf32>,
    %49 = vector.extract_strided_slice %8 {offsets = [8, 8], sizes = [8, 8], strides = [1, 1]} : vector<32x16xf32> to vector<8x8xf32>
    %c48_40 = arith.constant 48 : index
    %c16_41 = arith.constant 16 : index
    %50 = vector.load %arg12[%c48_40, %c16_41] : memref<128x32xf32, #tpu.memory_space<vmem>>, vector<8x8xf32>
    tpu.vector_store %arg12[%c48_40, %c16_41], %49 {strides = array<i32>} : memref<128x32xf32, #tpu.memory_space<vmem>>, vector<8x8xf32>,
    %51 = vector.extract_strided_slice %18 {offsets = [8, 8], sizes = [8, 8], strides = [1, 1]} : vector<16x32xf32> to vector<8x8xf32>
    %c24_42 = arith.constant 24 : index
    %c56 = arith.constant 56 : index
    %52 = vector.load %arg11[%c24_42, %c56] : memref<32x128xf32, #tpu.memory_space<vmem>>, vector<8x8xf32>
    tpu.vector_store %arg11[%c24_42, %c56], %51 {strides = array<i32>} : memref<32x128xf32, #tpu.memory_space<vmem>>, vector<8x8xf32>,
    %53 = vector.extract_strided_slice %8 {offsets = [8, 8], sizes = [8, 8], strides = [1, 1]} : vector<32x16xf32> to vector<8x8xf32>
    %c56_43 = arith.constant 56 : index
    %c24_44 = arith.constant 24 : index
    %54 = vector.load %arg12[%c56_43, %c24_44] : memref<128x32xf32, #tpu.memory_space<vmem>>, vector<8x8xf32>
    tpu.vector_store %arg12[%c56_43, %c24_44], %53 {strides = array<i32>} : memref<128x32xf32, #tpu.memory_space<vmem>>, vector<8x8xf32>,
    %55 = vector.extract_strided_slice %18 {offsets = [0, 16], sizes = [8, 8], strides = [1, 1]} : vector<16x32xf32> to vector<8x8xf32>
    %c0_45 = arith.constant 0 : index
    %c64 = arith.constant 64 : index
    %56 = vector.load %arg11[%c0_45, %c64] : memref<32x128xf32, #tpu.memory_space<vmem>>, vector<8x8xf32>
    tpu.vector_store %arg11[%c0_45, %c64], %55 {strides = array<i32>} : memref<32x128xf32, #tpu.memory_space<vmem>>, vector<8x8xf32>,
    %57 = vector.extract_strided_slice %8 {offsets = [16, 0], sizes = [8, 8], strides = [1, 1]} : vector<32x16xf32> to vector<8x8xf32>
    %c64_46 = arith.constant 64 : index
    %c0_47 = arith.constant 0 : index
    %58 = vector.load %arg12[%c64_46, %c0_47] : memref<128x32xf32, #tpu.memory_space<vmem>>, vector<8x8xf32>
    tpu.vector_store %arg12[%c64_46, %c0_47], %57 {strides = array<i32>} : memref<128x32xf32, #tpu.memory_space<vmem>>, vector<8x8xf32>,
    %59 = vector.extract_strided_slice %18 {offsets = [0, 16], sizes = [8, 8], strides = [1, 1]} : vector<16x32xf32> to vector<8x8xf32>
    %c8_48 = arith.constant 8 : index
    %c72 = arith.constant 72 : index
    %60 = vector.load %arg11[%c8_48, %c72] : memref<32x128xf32, #tpu.memory_space<vmem>>, vector<8x8xf32>
    tpu.vector_store %arg11[%c8_48, %c72], %59 {strides = array<i32>} : memref<32x128xf32, #tpu.memory_space<vmem>>, vector<8x8xf32>,
    %61 = vector.extract_strided_slice %8 {offsets = [16, 0], sizes = [8, 8], strides = [1, 1]} : vector<32x16xf32> to vector<8x8xf32>
    %c72_49 = arith.constant 72 : index
    %c8_50 = arith.constant 8 : index
    %62 = vector.load %arg12[%c72_49, %c8_50] : memref<128x32xf32, #tpu.memory_space<vmem>>, vector<8x8xf32>
    tpu.vector_store %arg12[%c72_49, %c8_50], %61 {strides = array<i32>} : memref<128x32xf32, #tpu.memory_space<vmem>>, vector<8x8xf32>,
    %63 = vector.extract_strided_slice %18 {offsets = [8, 16], sizes = [8, 8], strides = [1, 1]} : vector<16x32xf32> to vector<8x8xf32>
    %c16_51 = arith.constant 16 : index
    %c80 = arith.constant 80 : index
    %64 = vector.load %arg11[%c16_51, %c80] : memref<32x128xf32, #tpu.memory_space<vmem>>, vector<8x8xf32>
    tpu.vector_store %arg11[%c16_51, %c80], %63 {strides = array<i32>} : memref<32x128xf32, #tpu.memory_space<vmem>>, vector<8x8xf32>,
    %65 = vector.extract_strided_slice %8 {offsets = [16, 8], sizes = [8, 8], strides = [1, 1]} : vector<32x16xf32> to vector<8x8xf32>
    %c80_52 = arith.constant 80 : index
    %c16_53 = arith.constant 16 : index
    %66 = vector.load %arg12[%c80_52, %c16_53] : memref<128x32xf32, #tpu.memory_space<vmem>>, vector<8x8xf32>
    tpu.vector_store %arg12[%c80_52, %c16_53], %65 {strides = array<i32>} : memref<128x32xf32, #tpu.memory_space<vmem>>, vector<8x8xf32>,
    %67 = vector.extract_strided_slice %18 {offsets = [8, 16], sizes = [8, 8], strides = [1, 1]} : vector<16x32xf32> to vector<8x8xf32>
    %c24_54 = arith.constant 24 : index
    %c88 = arith.constant 88 : index
    %68 = vector.load %arg11[%c24_54, %c88] : memref<32x128xf32, #tpu.memory_space<vmem>>, vector<8x8xf32>
    tpu.vector_store %arg11[%c24_54, %c88], %67 {strides = array<i32>} : memref<32x128xf32, #tpu.memory_space<vmem>>, vector<8x8xf32>,
    %69 = vector.extract_strided_slice %8 {offsets = [16, 8], sizes = [8, 8], strides = [1, 1]} : vector<32x16xf32> to vector<8x8xf32>
    %c88_55 = arith.constant 88 : index
    %c24_56 = arith.constant 24 : index
    %70 = vector.load %arg12[%c88_55, %c24_56] : memref<128x32xf32, #tpu.memory_space<vmem>>, vector<8x8xf32>
    tpu.vector_store %arg12[%c88_55, %c24_56], %69 {strides = array<i32>} : memref<128x32xf32, #tpu.memory_space<vmem>>, vector<8x8xf32>,
    %71 = vector.extract_strided_slice %18 {offsets = [0, 24], sizes = [8, 8], strides = [1, 1]} : vector<16x32xf32> to vector<8x8xf32>
    %c0_57 = arith.constant 0 : index
    %c96 = arith.constant 96 : index
    %72 = vector.load %arg11[%c0_57, %c96] : memref<32x128xf32, #tpu.memory_space<vmem>>, vector<8x8xf32>
    tpu.vector_store %arg11[%c0_57, %c96], %71 {strides = array<i32>} : memref<32x128xf32, #tpu.memory_space<vmem>>, vector<8x8xf32>,
    %73 = vector.extract_strided_slice %8 {offsets = [24, 0], sizes = [8, 8], strides = [1, 1]} : vector<32x16xf32> to vector<8x8xf32>
    %c96_58 = arith.constant 96 : index
    %c0_59 = arith.constant 0 : index
    %74 = vector.load %arg12[%c96_58, %c0_59] : memref<128x32xf32, #tpu.memory_space<vmem>>, vector<8x8xf32>
    tpu.vector_store %arg12[%c96_58, %c0_59], %73 {strides = array<i32>} : memref<128x32xf32, #tpu.memory_space<vmem>>, vector<8x8xf32>,
    %75 = vector.extract_strided_slice %18 {offsets = [0, 24], sizes = [8, 8], strides = [1, 1]} : vector<16x32xf32> to vector<8x8xf32>
    %c8_60 = arith.constant 8 : index
    %c104 = arith.constant 104 : index
    %76 = vector.load %arg11[%c8_60, %c104] : memref<32x128xf32, #tpu.memory_space<vmem>>, vector<8x8xf32>
    tpu.vector_store %arg11[%c8_60, %c104], %75 {strides = array<i32>} : memref<32x128xf32, #tpu.memory_space<vmem>>, vector<8x8xf32>,
    %77 = vector.extract_strided_slice %8 {offsets = [24, 0], sizes = [8, 8], strides = [1, 1]} : vector<32x16xf32> to vector<8x8xf32>
    %c104_61 = arith.constant 104 : index
    %c8_62 = arith.constant 8 : index
    %78 = vector.load %arg12[%c104_61, %c8_62] : memref<128x32xf32, #tpu.memory_space<vmem>>, vector<8x8xf32>
    tpu.vector_store %arg12[%c104_61, %c8_62], %77 {strides = array<i32>} : memref<128x32xf32, #tpu.memory_space<vmem>>, vector<8x8xf32>,
    %79 = vector.extract_strided_slice %18 {offsets = [8, 24], sizes = [8, 8], strides = [1, 1]} : vector<16x32xf32> to vector<8x8xf32>
    %c16_63 = arith.constant 16 : index
    %c112 = arith.constant 112 : index
    %80 = vector.load %arg11[%c16_63, %c112] : memref<32x128xf32, #tpu.memory_space<vmem>>, vector<8x8xf32>
    tpu.vector_store %arg11[%c16_63, %c112], %79 {strides = array<i32>} : memref<32x128xf32, #tpu.memory_space<vmem>>, vector<8x8xf32>,
    %81 = vector.extract_strided_slice %8 {offsets = [24, 8], sizes = [8, 8], strides = [1, 1]} : vector<32x16xf32> to vector<8x8xf32>
    %c112_64 = arith.constant 112 : index
    %c16_65 = arith.constant 16 : index
    %82 = vector.load %arg12[%c112_64, %c16_65] : memref<128x32xf32, #tpu.memory_space<vmem>>, vector<8x8xf32>
    tpu.vector_store %arg12[%c112_64, %c16_65], %81 {strides = array<i32>} : memref<128x32xf32, #tpu.memory_space<vmem>>, vector<8x8xf32>,
    %83 = vector.extract_strided_slice %18 {offsets = [8, 24], sizes = [8, 8], strides = [1, 1]} : vector<16x32xf32> to vector<8x8xf32>
    %c24_66 = arith.constant 24 : index
    %c120 = arith.constant 120 : index
    %84 = vector.load %arg11[%c24_66, %c120] : memref<32x128xf32, #tpu.memory_space<vmem>>, vector<8x8xf32>
    tpu.vector_store %arg11[%c24_66, %c120], %83 {strides = array<i32>} : memref<32x128xf32, #tpu.memory_space<vmem>>, vector<8x8xf32>,
    %85 = vector.extract_strided_slice %8 {offsets = [24, 8], sizes = [8, 8], strides = [1, 1]} : vector<32x16xf32> to vector<8x8xf32>
    %c120_67 = arith.constant 120 : index
    %c24_68 = arith.constant 24 : index
    %86 = vector.load %arg12[%c120_67, %c24_68] : memref<128x32xf32, #tpu.memory_space<vmem>>, vector<8x8xf32>
    tpu.vector_store %arg12[%c120_67, %c24_68], %85 {strides = array<i32>} : memref<128x32xf32, #tpu.memory_space<vmem>>, vector<8x8xf32>,
    %c0_69 = arith.constant 0 : index
    %c0_70 = arith.constant 0 : index
    %87 = vector.load %arg11[%c0_69, %c0_70] : memref<32x128xf32, #tpu.memory_space<vmem>>, vector<32x128xf32>
    %cst_71 = arith.constant dense<0.000000e+00> : vector<32x128xf32>
    %88 = tpu.matmul %7, %87, %cst_71 {dimension_numbers = #tpu.dot_dimension_numbers<[1], [0], [0], [1], [0, 0, 1, 1], [], []>} : vector<32x32xf32>, vector<32x128xf32>, vector<32x128xf32> -> vector<32x128xf32>
    %c0_72 = arith.constant 0 : index
    %c0_73 = arith.constant 0 : index
    %89 = vector.load %arg8[%c0_72, %c0_73] : memref<32x128xf32, #tpu.memory_space<vmem>>, vector<32x128xf32>
    %90 = arith.addf %88, %89 : vector<32x128xf32>
    %cst_74 = arith.constant dense<0xFF800000> : vector<32xf32>
    %91 = vector.multi_reduction <maximumf>, %90, %cst_74 [1] : vector<32x128xf32> to vector<32xf32>
    %92 = vector.shape_cast %91 : vector<32xf32> to vector<32x1xf32>
    %93 = vector.broadcast %92 : vector<32x1xf32> to vector<32x128xf32>
    %94 = arith.subf %90, %93 : vector<32x128xf32>
    %95 = math.exp %94 : vector<32x128xf32>
    %c0_75 = arith.constant 0 : index
    %c0_76 = arith.constant 0 : index
    %96 = vector.load %arg12[%c0_75, %c0_76] : memref<128x32xf32, #tpu.memory_space<vmem>>, vector<128x32xf32>
    %cst_77 = arith.constant dense<0.000000e+00> : vector<32x32xf32>
    %97 = tpu.matmul %95, %96, %cst_77 {dimension_numbers = #tpu.dot_dimension_numbers<[1], [0], [0], [1], [0, 0, 1, 1], [], []>} : vector<32x128xf32>, vector<128x32xf32>, vector<32x32xf32> -> vector<32x32xf32>
    %c0_78 = arith.constant 0 : index
    %c0_79 = arith.constant 0 : index
    %98 = vector.load %arg9[%c0_78, %c0_79] : memref<128x32xf32, #tpu.memory_space<vmem>>, vector<128x32xf32>
    %cst_80 = arith.constant dense<0.000000e+00> : vector<32x32xf32>
    %99 = tpu.matmul %95, %98, %cst_80 {dimension_numbers = #tpu.dot_dimension_numbers<[1], [0], [0], [1], [0, 0, 1, 1], [], []>} : vector<32x128xf32>, vector<128x32xf32>, vector<32x32xf32> -> vector<32x32xf32>
    %cst_81 = arith.constant 1.000000e-30 : f32
    %100 = vector.broadcast %cst_81 : f32 to vector<32x32xf32>
    %101 = arith.maximumf %99, %100 : vector<32x32xf32>
    %102 = arith.divf %97, %101 : vector<32x32xf32>
    %c0_82 = arith.constant 0 : index
    %c0_83 = arith.constant 0 : index
    %103 = vector.load %arg7[%c0_82, %c0_83] : memref<32x32xf32, #tpu.memory_space<vmem>>, vector<32x32xf32>
    %cst_84 = arith.constant dense<0.000000e+00> : vector<32x32xf32>
    %104 = tpu.matmul %102, %103, %cst_84 {dimension_numbers = #tpu.dot_dimension_numbers<[1], [0], [0], [1], [0, 0, 1, 1], [], []>} : vector<32x32xf32>, vector<32x32xf32>, vector<32x32xf32> -> vector<32x32xf32>
    %c0_85 = arith.constant 0 : index
    %c0_86 = arith.constant 0 : index
    %105 = vector.load %arg10[%c0_85, %c0_86] : memref<32x32xf32, #tpu.memory_space<vmem>>, vector<32x32xf32>
    tpu.vector_store %arg10[%c0_85, %c0_86], %104 {strides = array<i32>} : memref<32x32xf32, #tpu.memory_space<vmem>>, vector<32x32xf32>,
    return
  }
  func.func @transform_0(%arg0: i32) -> (i32, i32) {
    %c0_i32 = arith.constant 0 : i32
    %c0_i32_0 = arith.constant 0 : i32
    return %arg0, %c0_i32 : i32, i32
  }
  func.func @transform_1(%arg0: i32) -> (i32, i32, i32) {
    %c0_i32 = arith.constant 0 : i32
    %c0_i32_0 = arith.constant 0 : i32
    %c0_i32_1 = arith.constant 0 : i32
    return %arg0, %c0_i32, %c0_i32_0 : i32, i32, i32
  }
  func.func @transform_2(%arg0: i32) -> (i32, i32) {
    %c0_i32 = arith.constant 0 : i32
    %c0_i32_0 = arith.constant 0 : i32
    return %arg0, %c0_i32 : i32, i32
  }
  func.func @transform_3(%arg0: i32) -> (i32, i32, i32) {
    %c0_i32 = arith.constant 0 : i32
    %c0_i32_0 = arith.constant 0 : i32
    %c0_i32_1 = arith.constant 0 : i32
    return %arg0, %c0_i32, %c0_i32_0 : i32, i32, i32
  }
  func.func @transform_4(%arg0: i32) -> (i32, i32) {
    %c0_i32 = arith.constant 0 : i32
    %c0_i32_0 = arith.constant 0 : i32
    %c0_i32_1 = arith.constant 0 : i32
    return %c0_i32, %c0_i32_0 : i32, i32
  }
  func.func @transform_5(%arg0: i32) -> (i32, i32) {
    %c0_i32 = arith.constant 0 : i32
    %c0_i32_0 = arith.constant 0 : i32
    %c0_i32_1 = arith.constant 0 : i32
    return %c0_i32, %c0_i32_0 : i32, i32
  }
  func.func @transform_6(%arg0: i32) -> (i32, i32) {
    %c0_i32 = arith.constant 0 : i32
    %c0_i32_0 = arith.constant 0 : i32
    %c0_i32_1 = arith.constant 0 : i32
    return %c0_i32, %c0_i32_0 : i32, i32
  }
  func.func @transform_7(%arg0: i32) -> (i32, i32) {
    %c0_i32 = arith.constant 0 : i32
    %c0_i32_0 = arith.constant 0 : i32
    %c0_i32_1 = arith.constant 0 : i32
    return %c0_i32, %c0_i32_0 : i32, i32
  }
  func.func @transform_8(%arg0: i32) -> (i32, i32) {
    %c0_i32 = arith.constant 0 : i32
    %c0_i32_0 = arith.constant 0 : i32
    %c0_i32_1 = arith.constant 0 : i32
    return %c0_i32, %c0_i32_0 : i32, i32
  }
  func.func @transform_9(%arg0: i32) -> (i32, i32) {
    %c0_i32 = arith.constant 0 : i32
    %c0_i32_0 = arith.constant 0 : i32
    return %arg0, %c0_i32 : i32, i32
  }
}

</mosaic_0001>

<bundles_post_ra>
// kernel: exaone_block_attention.1
= control target key start
LH: loop header
LB: loop body
LE: loop exit
PB: predicated region body
PF: predicated region fallthrough
CT: control target
= control target key end

     0   :  { %s2118_s0 = inlined_call_operand.vmem [shape: f32[64,32], index: 0, kind: input, shape index: {}]   ;;  %s2119_s1 = inlined_call_operand.vmem [shape: f32[2,32,32], index: 1, kind: input, shape index: {}]   ;;  %s2120_s2 = inlined_call_operand.vmem [shape: f32[64,80], index: 2, kind: input, shape index: {}]   ;;  %s2121_s3 = inlined_call_operand.vmem [shape: f32[2,32,32], index: 3, kind: input, shape index: {}]   ;;  %s2122_s4 = inlined_call_operand.vmem [shape: f32[32,80], index: 4, kind: input, shape index: {}]   ;;  %s2123_s5 = inlined_call_operand.vmem [shape: f32[32,32], index: 5, kind: input, shape index: {}]   ;;  %s2124_s6 = inlined_call_operand.vmem [shape: f32[32,32], index: 6, kind: input, shape index: {}]   ;;  %s2125_s7 = inlined_call_operand.vmem [shape: f32[32,128], index: 7, kind: input, shape index: {}]   ;;  %s2126_s8 = inlined_call_operand.vmem [shape: f32[128,32], index: 8, kind: input, shape index: {}]   ;;  %s2127_s9 = inlined_call_operand.hbm [shape: f32[64,32], index: 9, kind: output, shape index: {}]  }
   0x1   :  { %2132 = sst [smem:[#allocation7_spill]] %s2118_s0 }
   0x2   :  { %14 = vsyncpa [#allocation5], 0 }
   0x3   :  { %16 = vsyncpa [#allocation5 + $0x1], 0  ;;  %s1789_s30 = smov 0   ;;  %s1791_s10 = smov 0  }
   0x4   :  { %s1793_s11 = smov 0   ;;  %s1795_s12 = smov 0  }
   0x5 LB: > { %s1810_s13 = sadd.s32 4294967295, %s1722_s12   ;;  %s1352_s14 = sadd.s32 4294967294, %s1722_s12   ;;  %s1722_s12 = sphi %s1795_s12, %s2141_s12   ;;  %s1718_s11 = sphi %s1793_s11, %s2140_s11   ;;  %s1714_s10 = sphi %s1791_s10, %s2139_s10   ;;  %s1710_s30 = sphi %s1789_s30, %s2138_s30  }
   0x6   : > { %s1814_s15 = sadd.s32 1, %s1722_s12   ;;  %s238_s16 = sadd.s32 1, %s1718_s11 }
   0x7   : > { %s235_s17 = ssub.s32 %s1722_s12, %s1814_s15  ;;  %p248_p0 = scmp.ne.s32.totalorder %s1718_s11, %s1714_s10 }
   0x8   : > { %p236_p1 = scmp.eq.s32.totalorder %s235_s17, 0  ;;  %p249_p2 = scmp.eq.s32.totalorder %s1810_s13, 1 }
   0x9   : > { %p254_p3 = scmp.ne.s32.totalorder %s1714_s10, %s1710_s30  ;;  %p255_p4 = scmp.eq.s32.totalorder %s1352_s14, 1 }
   0xa   : > { %s1825_s18 = scalar_select %p236_p1, %s1718_s11, %s238_s16  }
   0xb   : > { %p1827_p5 = por %p249_p2, %p248_p0  ;;  %p1831_p6 = por %p255_p4, %p254_p3 }
   0xc   : > { %p1355_p7 = scmp.ge.s32.totalorder %s1722_s12, 1  ;;  %p322_p8 = scmp.lt.s32.totalorder %s1722_s12, 3 }
   0xe   : > { %p323_p9 = pnand %p1355_p7, %p322_p8 }
   0xf   : > { %p379_p10 = scmp.lt.s32.totalorder (!%p323_p9), %s1810_s13, 1  ;;  %s1357_s23 = sshll.u32 (!%p323_p9), %s1810_s13, 2 }
  0x10   : > { %326 = sbr.rel (%p323_p9) target bundleno = 1170 (0x492), region = 56  ;;  %p374_p11 = scmp.lt.s32.totalorder (!%p323_p9), %s1357_s23, 7 }
  0x11   : > { %s2135_s0 = sld [smem:[#allocation7_spill]] (!%p323_p9)  ;;  %s1726_s21 = smov (!%p323_p9), 24  }
  0x12   : > { %s1728_s24 = smov (!%p323_p9), 48   ;;  %s2130_s25 = smov (!%p323_p9), 96  }
  0x13   : > { %s1731_s27 = smov (!%p323_p9), 64   ;;  %s1732_s29 = smov (!%p323_p9), 8  }
  0x15   : > { %vm404_vm0 = vcmask 261120   ;;  %v530_v0 = vld [vmem:[%s2123_s5] sm:$0xff]  ;;  %v403_v1 = vld [vmem:[%s2122_s4 + $0x18] sm:$0xff]  ;;  %v402_v2 = vld [vmem:[%s2122_s4 + $0x10] sm:$0xff]  ;;  %s1850_s28 = scalar_select %p379_p10, %s1810_s13, 1  ;;  %v1724_v16 = vmov 0.0  }
  0x16   : > { %1483 = vmatprep.mubr.msk.f32.mxu1 %vm404_vm0, %v530_v0  ;;  %1461 = vmatprep.subr.mxu0 %v403_v1  ;;  %v401_v3 = vld [vmem:[%s2122_s4 + $0x8] sm:$0xff]  ;;  %s2143_s23 = smov (!%p374_p11, %s1357_s23), 7  ;;  %v400_v4 = vld [vmem:[%s2122_s4] sm:$0xff]  ;;  %v532_v14 = vld [vmem:[%s2123_s5 + $0x10] sm:$0xff]  ;;  %647 = vst [vmem:[#allocation2 + $0x10] sm:$0xff] %v1724_v16  ;;  %vm665_vm1 = vcmask 64512  }
  0x17   : > { %1462 = vmatpush3.msra.mxu0 %v403_v1  ;;  %s1386_s16 = sshll.u32 %s1850_s28, 5  ;;  %s1358_s26 = sshll.u32 %s2143_s23, 3  ;;  %v531_v12 = vld [vmem:[%s2123_s5 + $0x8] sm:$0xff]  ;;  %v533_v15 = vld [vmem:[%s2123_s5 + $0x18] sm:$0xff]  ;;  %645 = vst [vmem:[#allocation2] sm:$0xff] %v1724_v16  ;;  %646 = vst [vmem:[#allocation2 + $0x8] sm:$0xff] %v1724_v16 }
  0x18   : > { %1463 = vmatprep.subr.mxu0 %v402_v2  ;;  %s383_s22 = scalar_lea.vmem %s2119_s1, %s1386_s16  ;;  %s377_s14 = scalar_lea.vmem %s2135_s0, %s1358_s26  ;;  %648 = vst [vmem:[#allocation2 + $0x18] sm:$0xff] %v1724_v16  ;;  %649 = vst.msk [vmem:[#allocation3] sm:$0xff] %vm404_vm0, %v1724_v16  ;;  %vm685_vm2 = vcmask 195712   ;;  %vm691_vm3 = vcmask 261312   ;;  %vm724_vm4 = vcmask 523712   ;;  %vm757_vm5 = vcmask 786112  }
  0x19   : > { %1464 = vmatpush3.msra.mxu0 %v402_v2  ;;  %v537_v5 = vld [vmem:[%s383_s22 + $0x18] sm:$0xff]  ;;  %v536_v6 = vld [vmem:[%s383_s22 + $0x10] sm:$0xff]  ;;  %v396_v7 = vld [vmem:[%s377_s14] sm:$0xff]  ;;  %650 = vst.msk [vmem:[#allocation3 + $0x8] sm:$0xff] %vm404_vm0, %v1724_v16  ;;  %s394_s17 = scalar_lea.vmem %s2121_s3, %s1386_s16  ;;  %s1725_s28 = smov 16   ;;  %vm790_vm6 = vcmask 1048512  }
  0x1a   : > { %1465 = vmatprep.subr.mxu0 %v401_v3  ;;  %1475 = vmatprep.subr.mxu1 %v537_v5  ;;  %v535_v8 = vld [vmem:[%s383_s22 + $0x8] sm:$0xff]  ;;  %v398_v10 = vld [vmem:[%s377_s14 + $0x10] sm:$0xff]  ;;  %v534_v11 = vld [vmem:[%s383_s22] sm:$0xff]  ;;  %651 = vst.msk [vmem:[#allocation3 + $0x10] sm:$0xff] %vm404_vm0, %v1724_v16  ;;  %s2128_s16 = smov 72   ;;  %s1730_s22 = smov 40  }
  0x1b   : > { %1466 = vmatpush3.msra.mxu0 %v401_v3  ;;  %1476 = vmatpush3.msra.mxu1 %v537_v5  ;;  %v397_v9 = vld [vmem:[%s377_s14 + $0x8] sm:$0xff]  ;;  %v399_v13 = vld [vmem:[%s377_s14 + $0x18] sm:$0xff]  ;;  %652 = vst.msk [vmem:[#allocation3 + $0x18] sm:$0xff] %vm404_vm0, %v1724_v16  ;;  %653 = vst.msk [vmem:[#allocation3 + $0x20] sm:$0xff] %vm404_vm0, %v1724_v16  ;;  %s1733_s14 = smov 88   ;;  %s388_s0 = scalar_lea.vmem %s2120_s2, %s1358_s26  ;;  %vm718_vm7 = vcmask 458112  }
  0x1c   : > { %1467 = vmatprep.subr.mxu0 %v400_v4  ;;  %1477 = vmatprep.subr.mxu1 %v536_v6  ;;  %654 = vst.msk [vmem:[#allocation3 + $0x28] sm:$0xff] %vm404_vm0, %v1724_v16  ;;  %655 = vst.msk [vmem:[#allocation3 + $0x30] sm:$0xff] %vm404_vm0, %v1724_v16  ;;  %v636_v18 = vld [vmem:[%s394_s17 + $0x8] sm:$0xff]  ;;  %v638_v20 = vld [vmem:[%s394_s17 + $0x18] sm:$0xff]  ;;  %s2136_s23 = smov 72   ;;  %vm751_vm8 = vcmask 720512  }
  0x1d   : > { %1468 = vmatpush3.msra.mxu0 %v400_v4  ;;  %1478 = vmatpush3.msra.mxu1 %v536_v6  ;;  %656 = vst.msk [vmem:[#allocation3 + $0x38] sm:$0xff] %vm404_vm0, %v1724_v16  ;;  %657 = vst.msk [vmem:[#allocation3 + $0x40] sm:$0xff] %vm404_vm0, %v1724_v16  ;;  %v635_v21 = vld [vmem:[%s394_s17] sm:$0xff]  ;;  %v637_v23 = vld [vmem:[%s394_s17 + $0x10] sm:$0xff]  ;;  %s1734_s17 = smov 32   ;;  %vm675_vm9 = vcmask 130112  }
  0x1e   : > { %1469 = vmatprep.mubr.msk.f32.mxu0 %vm404_vm0, %v396_v7  ;;  %1479 = vmatprep.subr.mxu1 %v535_v8  ;;  %658 = vst.msk [vmem:[#allocation3 + $0x48] sm:$0xff] %vm404_vm0, %v1724_v16  ;;  %659 = vst.msk [vmem:[#allocation3 + $0x50] sm:$0xff] %vm404_vm0, %v1724_v16  ;;  %v502_v33 = vld [vmem:[%s388_s0] sm:$0xff]  ;;  %v503_v36 = vld [vmem:[%s388_s0 + $0x8] sm:$0xff]  ;;  %vm784_vm10 = vcmask 982912   ;;  %vm709_vm11 = vcmask 392512  }
  0x1f   : > { %1470 = vmatmul.mubr.msk.f32.vlgmr.msra.gmra.mxu0 %vm404_vm0, %v397_v9  ;;  %1480 = vmatpush3.msra.mxu1 %v535_v8  ;;  %660 = vst.msk [vmem:[#allocation3 + $0x58] sm:$0xff] %vm404_vm0, %v1724_v16  ;;  %661 = vst.msk [vmem:[#allocation3 + $0x60] sm:$0xff] %vm404_vm0, %v1724_v16  ;;  %v504_v38 = vld [vmem:[%s388_s0 + $0x10] sm:$0xff]  ;;  %v505_v41 = vld [vmem:[%s388_s0 + $0x18] sm:$0xff]  ;;  %vm700_vm12 = vcmask 326912   ;;  %vm742_vm13 = vcmask 654912  }
  0x20   : > { %1472 = vmatprep.mubr.msk.f32.mxu0 %vm404_vm0, %v398_v10  ;;  %1481 = vmatprep.subr.mxu1 %v534_v11  ;;  %662 = vst.msk [vmem:[#allocation3 + $0x68] sm:$0xff] %vm404_vm0, %v1724_v16  ;;  %663 = vst.msk [vmem:[#allocation3 + $0x70] sm:$0xff] %vm404_vm0, %v1724_v16  ;;  %vm733_vm14 = vcmask 589312   ;;  %vm775_vm15 = vcmask 917312   ;;  %s370_s0 = sand.u32 1, %s1714_s10  }
  0x21   : > { %1482 = vmatpush3.msra.mxu1 %v534_v11  ;;  %664 = vst.msk [vmem:[#allocation3 + $0x78] sm:$0xff] %vm404_vm0, %v1724_v16  ;;  %s1356_s26 = sshll.u32 %s370_s0, 5 }
  0x22   : > { %1484 = vmatmul.mubr.msk.f32.vlgmr.msra.gmra.mxu1 %vm404_vm0, %v531_v12 }
  0x23   : > { %1473 = vmatmul.mubr.msk.f32.gmra.mxu0 %vm404_vm0, %v399_v13  ;;  %1486 = vmatprep.mubr.msk.f32.mxu1 %vm404_vm0, %v532_v14 }
  0x26   : > { %1487 = vmatmul.mubr.msk.f32.gmra.mxu1 %vm404_vm0, %v533_v15 }
  0xdf   : > { %v1471_v31 = vpop.f32.mrf.mxu0 }
  0xe0   : > { %v1922_v39 = vmul.f32 %v1471_v31, %v503_v36  ;;  %v1033_v31 = vld [vmem:[%s2126_s8 + $0x58] sm:$0xff]  ;;  %v800_v36 = vld [vmem:[%s2125_s7] sm:$0xff] }
  0xe1   : > { %v483_v32 = vpop.f32.mrf.mxu0 }
  0xe2   : > { %v1485_v17 = vpop.f32.mrf.mxu1  ;;  %v1920_v35 = vmul.f32 %v502_v33, %v483_v32  ;;  %v1032_v32 = vld [vmem:[%s2126_s8 + $0x50] sm:$0xff]  ;;  %v801_v33 = vld [vmem:[%s2125_s7 + $0x8] sm:$0xff] }
  0xe3   : > { %v640_v24 = vmul.f32 %v1485_v17, %v636_v18  ;;  %v1474_v34 = vpop.f32.mrf.mxu0 }
  0xe4   : > { %v616_v19 = vpop.f32.mrf.mxu1  ;;  %v1929_v42 = vmul.f32 %v1474_v34, %v505_v41 }
  0xe5   : > { %v639_v27 = vmul.f32 %v635_v21, %v616_v19  ;;  %v493_v37 = vpop.f32.mrf.mxu0 }
  0xe6   : > { %v1488_v22 = vpop.f32.mrf.mxu1  ;;  %v1927_v40 = vmul.f32 %v504_v38, %v493_v37 }
  0xe7   : > { %v642_v25 = vmul.f32 %v1488_v22, %v638_v20 }
  0xe8   : > { %v626_v26 = vpop.f32.mrf.mxu1 }
  0xe9   : > { %v644_v28 = vadd.f32 %v642_v25, %v640_v24  ;;  %v641_v29 = vmul.f32 %v637_v23, %v626_v26 }
  0xeb   : > { %v643_v30 = vadd.f32 %v641_v29, %v639_v27  ;;  %682 = vrot.lane.b32.xlu1 %v644_v28, %s1725_s28  ;;  %688 = vrot.lane.b32.xlu0 %v644_v28, %s1726_s21  ;;  %v1037_v27 = vld [vmem:[%s2126_s8 + $0x78] sm:$0xff]  ;;  %v1035_v29 = vld [vmem:[%s2126_s8 + $0x68] sm:$0xff] }
  0xed   : > { %666 = vst.msk [vmem:[#allocation2] sm:$0xff] %vm665_vm1, %v643_v30 }
  0xef   : > { %754 = vrot.lane.b32.xlu1 %v644_v28, %s2128_s16  ;;  %721 = vrot.lane.b32.xlu0 %v644_v28, %s1728_s24  ;;  %s2137_s16 = smov 96  }
  0xf3   : > { %787 = vrot.lane.b32.xlu1 %v644_v28, %s2130_s25  ;;  %715 = vrot.lane.b32.xlu0 %v644_v28, %s1730_s22  ;;  %s1735_s25 = smov 56   ;;  %s1736_s22 = smov 80  }
  0xf7   : > { %748 = vrot.lane.b32.xlu1 %v644_v28, %s1731_s27  ;;  %672 = vrot.lane.b32.xlu0 %v643_v30, %s1732_s29 }
  0xfb   : > { %781 = vrot.lane.b32.xlu1 %v644_v28, %s1733_s14  ;;  %706 = vrot.lane.b32.xlu0 %v643_v30, %s1734_s17  ;;  %v1036_v28 = vld [vmem:[%s2126_s8 + $0x70] sm:$0xff]  ;;  %s2077_s14 = scalar_lea.sflag [#allocation5], %s370_s0  ;;  %s1737_s17 = smov [#allocation4]  }
  0xfc   : > { %s1666_s28 = sshll.u32 %s1737_s17, 4  ;;  %s1667_s28 = int_to_ptr.vmem [resolvable:$false] %s1666_s28 }
  0xff   : > { %697 = vrot.lane.b32.xlu1 %v643_v30, %s1726_s21  ;;  %739 = vrot.lane.b32.xlu0 %v643_v30, %s1735_s25  ;;  %s372_s21 = scalar_lea.vmem [#allocation4], %s1356_s26 }
 0x103   : > { %730 = vrot.lane.b32.xlu1 %v643_v30, %s1728_s24  ;;  %772 = vrot.lane.b32.xlu0 %v643_v30, %s1736_s22 }
 0x107   : > { %763 = vrot.lane.b32.xlu0 %v643_v30, %s2136_s23  ;;  %514 = vrot.lane.b32.xlu1 %v1920_v35, %s2137_s16  ;;  %v1034_v30 = vld [vmem:[%s2126_s8 + $0x60] sm:$0xff] }
 0x10b   : > { %516 = vrot.lane.b32.xlu0 %v1922_v39, %s2137_s16  ;;  %518 = vrot.lane.b32.xlu1 %v1927_v40, %s2137_s16 }
 0x10f   : > { %520 = vrot.lane.b32.xlu0 %v1929_v42, %s2137_s16  ;;  %777 = vrot.lane.b32.xlu1 %v1929_v42, %s2136_s23  ;;  %s1668_s16 = scalar_lea.vmem %s1667_s28, 1024 }
 0x113   : > { %792 = vrot.lane.b32.xlu0 %v1929_v42, %s1736_s22  ;;  %768 = vrot.lane.b32.xlu1 %v1929_v42, %s1731_s27 }
 0x117   : > { %759 = vrot.lane.b32.xlu0 %v1927_v40, %s1736_s22  ;;  %744 = vrot.lane.b32.xlu1 %v1927_v40, %s2136_s23 }
 0x11b   : > { %735 = vrot.lane.b32.xlu0 %v1927_v40, %s1731_s27  ;;  %726 = vrot.lane.b32.xlu1 %v1922_v39, %s1736_s22 }
 0x11f   : > { %711 = vrot.lane.b32.xlu0 %v1922_v39, %s2136_s23  ;;  %702 = vrot.lane.b32.xlu1 %v1922_v39, %s1731_s27 }
 0x15d   : > { %v683_v43 = vpop.permute.xlu1 %682  ;;  %v689_v44 = vpop.permute.xlu0 %688 }
 0x15e   : > { %686 = vst.msk [vmem:[#allocation2 + $0x10] sm:$0xff] %vm685_vm2, %v683_v43 }
 0x15f   : > { %692 = vst.msk [vmem:[#allocation2 + $0x18] sm:$0xff] %vm691_vm3, %v689_v44 }
 0x161   : > { %v755_v45 = vpop.permute.xlu1 %754  ;;  %v722_v46 = vpop.permute.xlu0 %721 }
 0x162   : > { %725 = vst.msk [vmem:[#allocation2 + $0x18] sm:$0xff] %vm724_vm4, %v722_v46  ;;  %vm766_vm4 = vcmask 851712   ;;  %v1031_v46 = vld [vmem:[%s2126_s8 + $0x48] sm:$0xff] }
 0x163   : > { %758 = vst.msk [vmem:[#allocation2 + $0x18] sm:$0xff] %vm757_vm5, %v755_v45 }
 0x165   : > { %v788_v47 = vpop.permute.xlu1 %787  ;;  %v716_v48 = vpop.permute.xlu0 %715 }
 0x166   : > { %791 = vst.msk [vmem:[#allocation2 + $0x18] sm:$0xff] %vm790_vm6, %v788_v47  ;;  %v1030_v47 = vld [vmem:[%s2126_s8 + $0x40] sm:$0xff] }
 0x167   : > { %719 = vst.msk [vmem:[#allocation2 + $0x10] sm:$0xff] %vm718_vm7, %v716_v48  ;;  %v1029_v48 = vld [vmem:[%s2126_s8 + $0x38] sm:$0xff] }
 0x169   : > { %v749_v49 = vpop.permute.xlu1 %748  ;;  %v673_v50 = vpop.permute.xlu0 %672 }
 0x16a   : > { %752 = vst.msk [vmem:[#allocation2 + $0x10] sm:$0xff] %vm751_vm8, %v749_v49  ;;  %v1028_v49 = vld [vmem:[%s2126_s8 + $0x30] sm:$0xff] }
 0x16b   : > { %676 = vst.msk [vmem:[#allocation2 + $0x8] sm:$0xff] %vm675_vm9, %v673_v50  ;;  %v1027_v50 = vld [vmem:[%s2126_s8 + $0x28] sm:$0xff] }
 0x16d   : > { %v782_v51 = vpop.permute.xlu1 %781  ;;  %v707_v52 = vpop.permute.xlu0 %706  ;;  %v799_v53 = vld [vmem:[#allocation2 + $0x18] sm:$0xff] }
 0x16e   : > { %785 = vst.msk [vmem:[#allocation2 + $0x10] sm:$0xff] %vm784_vm10, %v782_v51  ;;  %1489 = vmatprep.subr.mxu0 %v799_v53  ;;  %v1026_v51 = vld [vmem:[%s2126_s8 + $0x20] sm:$0xff] }
 0x16f   : > { %710 = vst.msk [vmem:[#allocation2 + $0x8] sm:$0xff] %vm709_vm11, %v707_v52  ;;  %1490 = vmatpush3.msra.mxu0 %v799_v53  ;;  %v1025_v52 = vld [vmem:[%s2126_s8 + $0x18] sm:$0xff]  ;;  %v1024_v53 = vld [vmem:[%s2126_s8 + $0x10] sm:$0xff] }
 0x171   : > { %v698_v54 = vpop.permute.xlu1 %697  ;;  %v740_v55 = vpop.permute.xlu0 %739 }
 0x172   : > { %701 = vst.msk [vmem:[#allocation2] sm:$0xff] %vm700_vm12, %v698_v54  ;;  %v1023_v54 = vld [vmem:[%s2126_s8 + $0x8] sm:$0xff] }
 0x173   : > { %743 = vst.msk [vmem:[#allocation2 + $0x8] sm:$0xff] %vm742_vm13, %v740_v55  ;;  %v1022_v55 = vld [vmem:[%s2126_s8] sm:$0xff] }
 0x175   : > { %v731_v56 = vpop.permute.xlu1 %730  ;;  %v773_v57 = vpop.permute.xlu0 %772  ;;  %v798_v58 = vld [vmem:[#allocation2 + $0x10] sm:$0xff] }
 0x176   : > { %734 = vst.msk [vmem:[#allocation2] sm:$0xff] %vm733_vm14, %v731_v56  ;;  %1491 = vmatprep.subr.mxu0 %v798_v58 }
 0x177   : > { %776 = vst.msk [vmem:[#allocation2 + $0x8] sm:$0xff] %vm775_vm15, %v773_v57  ;;  %1492 = vmatpush3.msra.mxu0 %v798_v58 }
 0x179   : > { %v764_v59 = vpop.permute.xlu0 %763  ;;  %v515_v60 = vpop.permute.xlu1 %514 }
 0x17a   : > { %767 = vst.msk [vmem:[#allocation2] sm:$0xff] %vm766_vm4, %v764_v59  ;;  %v526_v61 = vadd.f32 %v515_v60, %v1920_v35 }
 0x17c   : > { %1497 = vmatprep.mubr.msk.f32.mxu0 %vm404_vm0, %v526_v61 }
 0x17d   : > { %v517_v62 = vpop.permute.xlu0 %516  ;;  %v519_v63 = vpop.permute.xlu1 %518 }
 0x17e   : > { %v797_v0 = vld [vmem:[#allocation2 + $0x8] sm:$0xff]  ;;  %v527_v4 = vadd.f32 %v517_v62, %v1922_v39  ;;  %v528_v5 = vadd.f32 %v519_v63, %v1927_v40  ;;  %v803_v40 = vld [vmem:[%s2125_s7 + $0x18] sm:$0xff] }
 0x17f   : > { %1493 = vmatprep.subr.mxu0 %v797_v0 }
 0x180   : > { %1494 = vmatpush3.msra.mxu0 %v797_v0 }
 0x181   : > { %v521_v1 = vpop.permute.xlu0 %520  ;;  %v778_v2 = vpop.permute.xlu1 %777  ;;  %v796_v3 = vld [vmem:[#allocation2] sm:$0xff] }
 0x182   : > { %780 = vst.msk [vmem:[#allocation3 + $0x68] sm:$0xff] %vm675_vm9, %v778_v2  ;;  %1495 = vmatprep.subr.mxu0 %v796_v3  ;;  %v529_v8 = vadd.f32 %v521_v1, %v1929_v42  ;;  %v802_v42 = vld [vmem:[%s2125_s7 + $0x10] sm:$0xff] }
 0x183   : > { %786 = vst.msk [vmem:[#allocation3 + $0x70] sm:$0xff] %vm685_vm2, %v778_v2  ;;  %1496 = vmatpush3.msra.mxu0 %v796_v3 }
 0x184   : > { %1498 = vmatmul.mubr.msk.f32.vlgmr.msra.gmra.mxu0 %vm404_vm0, %v527_v4  ;;  %1541 = vmatprep.subr.mxu0 %v1037_v27 }
 0x185   : > { %v793_v6 = vpop.permute.xlu0 %792  ;;  %1500 = vmatprep.mubr.msk.f32.mxu0 %vm404_vm0, %v528_v5  ;;  %v769_v7 = vpop.permute.xlu1 %768  ;;  %1542 = vmatpush3.msra.mxu0 %v1037_v27 }
 0x186   : > { %795 = vst.msk [vmem:[#allocation3 + $0x78] sm:$0xff] %vm691_vm3, %v793_v6  ;;  %1543 = vmatprep.subr.mxu0 %v1036_v28 }
 0x187   : > { %771 = vst.msk [vmem:[#allocation3 + $0x60] sm:$0xff] %vm665_vm1, %v769_v7  ;;  %1544 = vmatpush3.msra.mxu0 %v1036_v28 }
 0x188   : > { %1501 = vmatmul.mubr.msk.f32.gmra.mxu0 %vm404_vm0, %v529_v8  ;;  %1545 = vmatprep.subr.mxu0 %v1035_v29 }
 0x189   : > { %v760_v9 = vpop.permute.xlu0 %759  ;;  %v745_v10 = vpop.permute.xlu1 %744  ;;  %v934_v17 = vld [vmem:[#allocation3 + $0x68] sm:$0xff]  ;;  %1546 = vmatpush3.msra.mxu0 %v1035_v29 }
 0x18a   : > { %762 = vst.msk [vmem:[#allocation3 + $0x58] sm:$0xff] %vm691_vm3, %v760_v9  ;;  %v935_v14 = vld [vmem:[#allocation3 + $0x70] sm:$0xff]  ;;  %1547 = vmatprep.subr.mxu0 %v1034_v30 }
 0x18b   : > { %747 = vst.msk [vmem:[#allocation3 + $0x48] sm:$0xff] %vm675_vm9, %v745_v10  ;;  %1548 = vmatpush3.msra.mxu0 %v1034_v30 }
 0x18c   : > { %753 = vst.msk [vmem:[#allocation3 + $0x50] sm:$0xff] %vm685_vm2, %v745_v10  ;;  %1549 = vmatprep.subr.mxu0 %v1033_v31 }
 0x18d   : > { %v736_v11 = vpop.permute.xlu0 %735  ;;  %v727_v12 = vpop.permute.xlu1 %726  ;;  %v936_v13 = vld [vmem:[#allocation3 + $0x78] sm:$0xff]  ;;  %1550 = vmatpush3.msra.mxu0 %v1033_v31 }
 0x18e   : > { %738 = vst.msk [vmem:[#allocation3 + $0x40] sm:$0xff] %vm665_vm1, %v736_v11  ;;  %1503 = vmatprep.subr.mxu1 %v936_v13  ;;  %v933_v18 = vld [vmem:[#allocation3 + $0x60] sm:$0xff]  ;;  %1551 = vmatprep.subr.mxu0 %v1032_v32 }
 0x18f   : > { %729 = vst.msk [vmem:[#allocation3 + $0x38] sm:$0xff] %vm691_vm3, %v727_v12  ;;  %1504 = vmatpush3.msra.mxu1 %v936_v13  ;;  %1552 = vmatpush3.msra.mxu0 %v1032_v32 }
 0x190   : > { %1505 = vmatprep.subr.mxu1 %v935_v14  ;;  %1553 = vmatprep.subr.mxu0 %v1031_v46 }
 0x191   : > { %v712_v15 = vpop.permute.xlu0 %711  ;;  %1506 = vmatpush3.msra.mxu1 %v935_v14  ;;  %v703_v16 = vpop.permute.xlu1 %702  ;;  %v932_v19 = vld [vmem:[#allocation3 + $0x58] sm:$0xff]  ;;  %1554 = vmatpush3.msra.mxu0 %v1031_v46 }
 0x192   : > { %714 = vst.msk [vmem:[#allocation3 + $0x28] sm:$0xff] %vm675_vm9, %v712_v15  ;;  %1507 = vmatprep.subr.mxu1 %v934_v17  ;;  %v930_v21 = vld [vmem:[#allocation3 + $0x48] sm:$0xff]  ;;  %1555 = vmatprep.subr.mxu0 %v1030_v47  ;;  %v1138_v14 = vld [vmem:[%s2124_s6 + $0x18] sm:$0xff] }
 0x193   : > { %720 = vst.msk [vmem:[#allocation3 + $0x30] sm:$0xff] %vm685_vm2, %v712_v15  ;;  %1508 = vmatpush3.msra.mxu1 %v934_v17  ;;  %v931_v20 = vld [vmem:[#allocation3 + $0x50] sm:$0xff]  ;;  %1556 = vmatpush3.msra.mxu0 %v1030_v47  ;;  %v1135_v17 = vld [vmem:[%s2124_s6] sm:$0xff] }
 0x194   : > { %705 = vst.msk [vmem:[#allocation3 + $0x20] sm:$0xff] %vm665_vm1, %v703_v16  ;;  %1509 = vmatprep.subr.mxu1 %v933_v18  ;;  %1557 = vmatprep.subr.mxu0 %v1029_v48  ;;  %v1137_v15 = vld [vmem:[%s2124_s6 + $0x10] sm:$0xff]  ;;  %v1136_v16 = vld [vmem:[%s2124_s6 + $0x8] sm:$0xff] }
 0x195   : > { %1510 = vmatpush3.msra.mxu1 %v933_v18  ;;  %v929_v22 = vld [vmem:[#allocation3 + $0x40] sm:$0xff]  ;;  %1558 = vmatpush3.msra.mxu0 %v1029_v48 }
 0x196   : > { %1511 = vmatprep.subr.mxu1 %v932_v19  ;;  %v928_v23 = vld [vmem:[#allocation3 + $0x38] sm:$0xff]  ;;  %1559 = vmatprep.subr.mxu0 %v1028_v49 }
 0x197   : > { %1512 = vmatpush3.msra.mxu1 %v932_v19  ;;  %1560 = vmatpush3.msra.mxu0 %v1028_v49 }
 0x198   : > { %1513 = vmatprep.subr.mxu1 %v931_v20  ;;  %1561 = vmatprep.subr.mxu0 %v1027_v50 }
 0x199   : > { %1514 = vmatpush3.msra.mxu1 %v931_v20  ;;  %v926_v25 = vld [vmem:[#allocation3 + $0x28] sm:$0xff]  ;;  %1562 = vmatpush3.msra.mxu0 %v1027_v50 }
 0x19a   : > { %1515 = vmatprep.subr.mxu1 %v930_v21  ;;  %v927_v24 = vld [vmem:[#allocation3 + $0x30] sm:$0xff]  ;;  %1563 = vmatprep.subr.mxu0 %v1026_v51 }
 0x19b   : > { %1516 = vmatpush3.msra.mxu1 %v930_v21  ;;  %v925_v26 = vld [vmem:[#allocation3 + $0x20] sm:$0xff]  ;;  %1564 = vmatpush3.msra.mxu0 %v1026_v51 }
 0x19c   : > { %1517 = vmatprep.subr.mxu1 %v929_v22  ;;  %1565 = vmatprep.subr.mxu0 %v1025_v52 }
 0x19d   : > { %1518 = vmatpush3.msra.mxu1 %v929_v22  ;;  %1566 = vmatpush3.msra.mxu0 %v1025_v52 }
 0x19e   : > { %1519 = vmatprep.subr.mxu1 %v928_v23  ;;  %1567 = vmatprep.subr.mxu0 %v1024_v53 }
 0x19f   : > { %1520 = vmatpush3.msra.mxu1 %v928_v23  ;;  %1568 = vmatpush3.msra.mxu0 %v1024_v53 }
 0x1a0   : > { %1521 = vmatprep.subr.mxu1 %v927_v24  ;;  %1569 = vmatprep.subr.mxu0 %v1023_v54 }
 0x1a1   : > { %1522 = vmatpush3.msra.mxu1 %v927_v24  ;;  %1570 = vmatpush3.msra.mxu0 %v1023_v54 }
 0x1a2   : > { %1523 = vmatprep.subr.mxu1 %v926_v25  ;;  %1571 = vmatprep.subr.mxu0 %v1022_v55 }
 0x1a3   : > { %1524 = vmatpush3.msra.mxu1 %v926_v25  ;;  %1572 = vmatpush3.msra.mxu0 %v1022_v55 }
 0x1a4   : > { %1525 = vmatprep.subr.mxu1 %v925_v26 }
 0x1a5   : > { %1526 = vmatpush3.msra.mxu1 %v925_v26 }
 0x244   : > { %v1499_v34 = vpop.f32.mrf.mxu0 }
 0x245   : > { %v888_v37 = vadd.f32 %v1499_v34, %v801_v33 }
 0x246   : > { %v882_v38 = vpop.f32.mrf.mxu0 }
 0x247   : > { %v883_v39 = vadd.f32 %v882_v38, %v800_v36  ;;  %903 = vmax.xlane.f32.xlu0 %v888_v37 }
 0x248   : > { %v1502_v41 = vpop.f32.mrf.mxu0 }
 0x249   : > { %901 = vmax.xlane.f32.xlu1 %v883_v39  ;;  %v898_v44 = vadd.f32 %v1502_v41, %v803_v40 }
 0x24a   : > { %v892_v43 = vpop.f32.mrf.mxu0 }
 0x24b   : > { %v893_v45 = vadd.f32 %v892_v43, %v802_v42 }
 0x24d   : > { %907 = vmax.xlane.f32.xlu1 %v898_v44  ;;  %905 = vmax.xlane.f32.xlu0 %v893_v45 }
 0x25e   : > { %677 = vrot.lane.b32.xlu1 %v1920_v35, %s2136_s23  ;;  %s1254_s23 = sshll.u32 %s372_s21, 4  ;;  %s2068_s23 = int_to_ptr.vmem [resolvable:$true] %s1254_s23 }
 0x25f   : > { %p1669_p1 = scmp.lt.s32.totalorder %s2068_s23, %s1667_s28 }
 0x263   : > { %693 = vrot.lane.b32.xlu0 %v1920_v35, %s1736_s22 }
 0x267   : > { %667 = vrot.lane.b32.xlu0 %v1920_v35, %s1731_s27  ;;  %s1388_s27 = sshll.u32 %s1810_s13, 9  ;;  %s1662_s13 = scalar_lea.vmem %s2068_s23, 512 }
 0x268   : > { %s2074_s25 = scalar_lea.hbm %s2127_s9, %s1388_s27  ;;  %p1663_p12 = scmp.ne.s32.totalorder %s2068_s23, %s1662_s13 }
 0x269   : > { %p1670_p2 = scmp.lt.s32.totalorder %s1668_s16, %s1662_s13 }
 0x26a   : > { %p1664_p13 = pnand %p1663_p12, %p1827_p5 }
 0x26b   : > { %p1671_p3 = por %p1670_p2, %p1669_p1 }
 0x26c   : > { %p1665_p0 = pneg %p1664_p13 }
 0x26e   : > { %p1672_p4 = pnand %p1671_p3, %p1665_p0 }
 0x2d0   : > { %v904_v56 = vpop.xlane.xlu0 %903 }
 0x2d1   : > { %v910_v57 = vsub.f32 %v888_v37, %v904_v56 }
 0x2d2   : > { %v902_v58 = vpop.xlane.xlu1 %901 }
 0x2d3   : > { %v909_v59 = vsub.f32 %v883_v39, %v902_v58  ;;  %v915_v60 = vmul.f32 1.442695, %v910_v57 }
 0x2d5   : > { %v913_v61 = vmul.f32 1.442695, %v909_v59 }
 0x2d6   : > { %v906_v62 = vpop.xlane.xlu0 %905  ;;  %v908_v63 = vpop.xlane.xlu1 %907 }
 0x2d7   : > { %1646 = vpow2.f32 %v913_v61  ;;  %v911_v0 = vsub.f32 %v893_v45, %v906_v62  ;;  %v912_v1 = vsub.f32 %v898_v44, %v908_v63 }
 0x2d8   : > { %1648 = vpow2.f32 %v915_v60 }
 0x2d9   : > { %v917_v2 = vmul.f32 1.442695, %v911_v0  ;;  %v919_v3 = vmul.f32 1.442695, %v912_v1 }
 0x2da   : > { %v694_v4 = vpop.permute.xlu0 %693  ;;  %v678_v5 = vpop.permute.xlu1 %677 }
 0x2db   : > { %1650 = vpow2.f32 %v917_v2  ;;  %696 = vst.msk [vmem:[#allocation3 + $0x18] sm:$0xff] %vm691_vm3, %v694_v4 }
 0x2dc   : > { %680 = vst.msk [vmem:[#allocation3 + $0x8] sm:$0xff] %vm675_vm9, %v678_v5  ;;  %1652 = vpow2.f32 %v919_v3 }
 0x2dd   : > { %687 = vst.msk [vmem:[#allocation3 + $0x10] sm:$0xff] %vm685_vm2, %v678_v5 }
 0x2de   : > { %v668_v35 = vpop.permute.xlu0 %667 }
 0x2df   : > { %670 = vst.msk [vmem:[#allocation3] sm:$0xff] %vm665_vm1, %v668_v35 }
 0x2e2   : > { %v924_v6 = vld [vmem:[#allocation3 + $0x18] sm:$0xff] }
 0x2e3   : > { %1527 = vmatprep.subr.mxu1 %v924_v6  ;;  %v922_v10 = vld [vmem:[#allocation3 + $0x8] sm:$0xff] }
 0x2e4   : > { %v1647_v7 = vpop.eup %1646  ;;  %1528 = vmatpush3.msra.mxu1 %v924_v6  ;;  %v923_v8 = vld [vmem:[#allocation3 + $0x10] sm:$0xff] }
 0x2e5   : > { %1529 = vmatprep.subr.mxu1 %v923_v8  ;;  %1535 = vmatprep.mubr.f32.mxu1 %v1647_v7  ;;  %v1649_v9 = vpop.eup %1648 }
 0x2e6   : > { %1573 = vmatprep.mubr.f32.mxu0 %v1647_v7  ;;  %1530 = vmatpush3.msra.mxu1 %v923_v8  ;;  %v921_v12 = vld [vmem:[#allocation3] sm:$0xff] }
 0x2e7   : > { %1574 = vmatmul.mubr.f32.vlgmr.msra.gmra.mxu0 %v1649_v9  ;;  %1531 = vmatprep.subr.mxu1 %v922_v10 }
 0x2e8   : > { %v1651_v11 = vpop.eup %1650  ;;  %1532 = vmatpush3.msra.mxu1 %v922_v10 }
 0x2e9   : > { %v1653_v13 = vpop.eup %1652  ;;  %1533 = vmatprep.subr.mxu1 %v921_v12  ;;  %1576 = vmatprep.mubr.f32.mxu0 %v1651_v11 }
 0x2ea   : > { %1534 = vmatpush3.msra.mxu1 %v921_v12 }
 0x2eb   : > { %1577 = vmatmul.mubr.f32.gmra.mxu0 %v1653_v13  ;;  %1536 = vmatmul.mubr.f32.vlgmr.msra.gmra.mxu1 %v1649_v9 }
 0x2ec   : > { %1538 = vmatprep.mubr.f32.mxu1 %v1651_v11  ;;  %1579 = vmatprep.subr.mxu1 %v1138_v14 }
 0x2ed   : > { %1580 = vmatpush3.msra.mxu1 %v1138_v14 }
 0x2ee   : > { %1581 = vmatprep.subr.mxu1 %v1137_v15 }
 0x2ef   : > { %1539 = vmatmul.mubr.f32.gmra.mxu1 %v1653_v13 }
 0x2f0   : > { %1582 = vmatpush3.msra.mxu1 %v1137_v15 }
 0x2f1   : > { %1583 = vmatprep.subr.mxu1 %v1136_v16 }
 0x2f2   : > { %1584 = vmatpush3.msra.mxu1 %v1136_v16 }
 0x2f3   : > { %1585 = vmatprep.subr.mxu1 %v1135_v17 }
 0x2f4   : > { %1586 = vmatpush3.msra.mxu1 %v1135_v17 }
 0x3a7   : > { %v1575_v18 = vpop.f32.mrf.mxu0 }
 0x3a8   : > { %v1124_v19 = vmax.f32 %v1575_v18, 1e-30 }
 0x3a9   : > { %v1104_v20 = vpop.f32.mrf.mxu0 }
 0x3aa   : > { %v1123_v21 = vmax.f32 %v1104_v20, 1e-30  ;;  %1654 = vrcp.f32 %v1124_v19 }
 0x3ab   : > { %v1578_v22 = vpop.f32.mrf.mxu0  ;;  %v1537_v26 = vpop.f32.mrf.mxu1 }
 0x3ac   : > { %1656 = vrcp.f32 %v1123_v21  ;;  %v1126_v23 = vmax.f32 %v1578_v22, 1e-30 }
 0x3ad   : > { %v1114_v24 = vpop.f32.mrf.mxu0  ;;  %v1003_v27 = vpop.f32.mrf.mxu1 }
 0x3ae   : > { %v1125_v25 = vmax.f32 %v1114_v24, 1e-30  ;;  %1658 = vrcp.f32 %v1126_v23 }
 0x3af   : > { %v1540_v30 = vpop.f32.mrf.mxu1 }
 0x3b0   : > { %1660 = vrcp.f32 %v1125_v25 }
 0x3b1   : > { %v1013_v36 = vpop.f32.mrf.mxu1 }
 0x3b7   : > { %v1655_v28 = vpop.eup %1654 }
 0x3b8   : > { %v1130_v32 = vmul.f32 %v1655_v28, %v1537_v26 }
 0x3b9   : > { %v1657_v29 = vpop.eup %1656 }
 0x3ba   : > { %v1128_v31 = vmul.f32 %v1657_v29, %v1003_v27 }
 0x3bb   : > { %v1659_v33 = vpop.eup %1658 }
 0x3bc   : > { %1587 = vmatprep.mubr.msk.f32.mxu1 %vm404_vm0, %v1128_v31  ;;  %v1134_v38 = vmul.f32 %v1659_v33, %v1540_v30 }
 0x3bd   : > { %v1661_v34 = vpop.eup %1660  ;;  %1588 = vmatmul.mubr.msk.f32.vlgmr.msra.gmra.mxu1 %vm404_vm0, %v1130_v32 }
 0x3be   : > { %v1132_v37 = vmul.f32 %v1661_v34, %v1013_v36 }
 0x3c0   : > { %1590 = vmatprep.mubr.msk.f32.mxu1 %vm404_vm0, %v1132_v37 }
 0x3c1   : > { %1591 = vmatmul.mubr.msk.f32.gmra.mxu1 %vm404_vm0, %v1134_v38 }
 0x47d   : > { %v1589_v39 = vpop.f32.mrf.mxu1 }
 0x47e   : > { %1237 = vst.msk [vmem:[%s372_s21 + $0x8] sm:$0xff] %vm404_vm0, %v1589_v39 }
 0x47f   : > { %v1217_v40 = vpop.f32.mrf.mxu1 }
 0x480   : > { %1236 = vst.msk [vmem:[%s372_s21] sm:$0xff] %vm404_vm0, %v1217_v40 }
 0x481   : > { %v1592_v41 = vpop.f32.mrf.mxu1 }
 0x482   : > { %1239 = vst.msk [vmem:[%s372_s21 + $0x18] sm:$0xff] %vm404_vm0, %v1592_v41 }
 0x483   : > { %v1227_v42 = vpop.f32.mrf.mxu1 }
 0x484   : > { %1238 = vst.msk [vmem:[%s372_s21 + $0x10] sm:$0xff] %vm404_vm0, %v1227_v42 }
 0x485   : > { %1675 = shalt.err (!%p1672_p4)
}
 0x486   : > { %s1676_s0 = scalar_lea.hbm %s2074_s25, 512  ;;  %s1680_s27 = scalar_lea.hbm %s2127_s9, 1024 }
 0x487   : > { %p1677_p7 = scmp.ne.s32.totalorder %s2074_s25, %s1676_s0  ;;  %p1681_p10 = scmp.lt.s32.totalorder %s2074_s25, %s2127_s9 }
 0x488   : > { %p1682_p11 = scmp.lt.s32.totalorder %s1680_s27, %s1676_s0 }
 0x489   : > { %p1678_p8 = pnand %p1677_p7, %p1827_p5 }
 0x48a   : > { %p1683_p12 = por %p1682_p11, %p1681_p10 }
 0x48b   : > { %p1679_p9 = pneg %p1678_p8 }
 0x48d   : > { %p1684_p13 = pnand %p1683_p12, %p1679_p9 }
 0x48f   : > { %1687 = shalt.err (!%p1684_p13)
}
 0x490   : > { %s1738_s13 = smov 128  }
 0x491   : > { %1593 = dma.vmem_to_hbm [thread:$0]  (%p1827_p5), %s2068_s23, 512, %s2074_s25, %s2077_s14, %s1738_s13, %s1738_s13, %s1732_s29  }
 0x492 PF: > { %p1599_p0 = scmp.ge.s32.totalorder %s1722_s12, 2  ;;  %s1269_s17 = sand.u32 1, %s1710_s30  }
 0x493   : > { %s1270_s28 = scalar_lea.sflag [#allocation5], %s1269_s17 }
 0x494   : > { %p1596_p1 = pnand %p1599_p0, %p1831_p6 }
 0x496   : > { %p1597_p2 = pneg %p1596_p1 }
 0x498   : > { %1705 = dma.done.wait (%p1597_p2), %s1270_s28, 512  }
 0x499   : > { %1707 = vsyncadd (%p1597_p2), %s1270_s28, 4294966784  ;;  %p19_p3 = scmp.ge.s32.totalorder %s1814_s15, 4   ;;  %s2138_s30 = smov %s1714_s10 }
 0x49a   : > { %s2139_s10 = smov %s1718_s11  ;;  %s2140_s11 = smov %s1825_s18 }
 0x49b   : > { %s2141_s12 = smov %s1814_s15  ;;  %21 = sbr.rel (!%p19_p3) target bundleno = 5 (0x5), region = 100 }
 0x4a0   :  { %1275 = vsyncpa [#allocation5], 1 }
 0x4a1   :  { %1277 = vsyncpa [#allocation5 + $0x1], 1 }

</bundles_post_ra>
